<compile_context>
chip_gen: v5e
topology: v5e:2x2
jax: 0.10.0
libtpu: 0.0.40
codegen_flags: <defaults>
</compile_context>

<pallas_src>
import functools

import jax
import jax.numpy as jnp
from jax.experimental import pallas as pl
from jax.experimental.pallas import tpu as pltpu

LN_EPS = 1e-5  # nn.LayerNorm default eps


def _round_up(x, m):
    return (x + m - 1) // m * m


def _layernorm_fused(h, gamma, beta, n):
    """LayerNorm with single-pass statistics (sum and sum-of-squares)."""
    inv_n = 1.0 / float(n)
    s = jnp.sum(h, axis=-1, keepdims=True)
    s2 = jnp.sum(h * h, axis=-1, keepdims=True)
    mu = s * inv_n
    var = s2 * inv_n - mu * mu
    return (h - mu) * jax.lax.rsqrt(var + LN_EPS) * gamma + beta


def actor_kernel(x_ref, w1_ref, w2_ref, w3_ref, vec_ref, b3_ref, out_ref,
                 *, action_bound, layer_1, layer_2):
    # x arrives f32 (no wrapper-side pad/cast); cast to bf16 only for the MXU.
    x = x_ref[...].astype(jnp.bfloat16)

    # Packed LN / bias vectors (static row slices -> zero runtime cost).
    b1 = vec_ref[0:1, :layer_1]
    g1 = vec_ref[1:2, :layer_1]
    be1 = vec_ref[2:3, :layer_1]
    b2 = vec_ref[3:4, :layer_2]
    g2 = vec_ref[4:5, :layer_2]
    be2 = vec_ref[5:6, :layer_2]

    # fc1 -> LayerNorm -> ReLU   (bf16 MXU operands, f32 accumulate/elementwise)
    h1 = jnp.dot(x, w1_ref[...], preferred_element_type=jnp.float32) + b1
    h1 = jnp.maximum(_layernorm_fused(h1, g1, be1, layer_1), 0.0)

    # fc2 -> LayerNorm -> ReLU
    h2 = jnp.dot(h1.astype(jnp.bfloat16), w2_ref[...],
                 preferred_element_type=jnp.float32) + b2
    h2 = jnp.maximum(_layernorm_fused(h2, g2, be2, layer_2), 0.0)

    # output -> tanh -> scale  (narrow, unpadded (TB, num_actions) store)
    o = jnp.dot(h2.astype(jnp.bfloat16), w3_ref[...],
                preferred_element_type=jnp.float32) + b3_ref[...]
    out_ref[...] = jnp.tanh(o) * action_bound


def prepare_actor_params(params):
    """One-time weight preparation (hoisted out of the per-call path).

    Returns (w1_bf16, w2_bf16, w3_bf16, packed_vecs_f32, b3_f32)."""
    (w1, b1, g1, be1, w2, b2, g2, be2, w3, b3) = params
    layer_1 = w1.shape[1]
    layer_2 = w2.shape[1]
    lw = _round_up(max(layer_1, layer_2), 128)

    vecs = jnp.zeros((8, lw), jnp.float32)
    vecs = (vecs
            .at[0, :layer_1].set(b1[0])
            .at[1, :layer_1].set(g1[0])
            .at[2, :layer_1].set(be1[0])
            .at[3, :layer_2].set(b2[0])
            .at[4, :layer_2].set(g2[0])
            .at[5, :layer_2].set(be2[0]))

    return (w1.astype(jnp.bfloat16),
            w2.astype(jnp.bfloat16),
            w3.astype(jnp.bfloat16),
            vecs,
            b3.astype(jnp.float32))


def actor_forward(x, prepared, action_bound, *, batch_tile=None):
    """x: (B, num_state) float32. prepared: output of prepare_actor_params.
    Returns (B, num_actions) float32."""
    w1_bf, w2_bf, w3_bf, vecs, b3 = prepared
    B, num_state = x.shape
    layer_1 = w1_bf.shape[1]
    layer_2 = w2_bf.shape[1]
    num_actions = w3_bf.shape[1]

    # Batch tiling: 16-aligned (bf16 sublane packing), capped at 512, and with
    # >= 2 grid steps whenever possible so v7x's 2 TCs both get work.
    B16 = _round_up(max(B, 16), 16)
    if batch_tile is None:
        if B16 >= 32:
            TB = min(512, _round_up(pl.cdiv(B16, 2), 16))
        else:
            TB = B16
    else:
        TB = _round_up(batch_tile, 16)
    B_pad = _round_up(B16, TB)
    grid = (B_pad // TB,)

    # Only the batch dim is ever padded (zero rows are numerically benign:
    # they pass through LN as a constant row, rsqrt(var+eps) stays finite).
    if B_pad != B:
        x_p = jnp.zeros((B_pad, num_state), jnp.float32).at[:B, :].set(x)
    else:
        x_p = x.astype(jnp.float32)

    def resident(shape):
        # Same block index every grid step -> parameter stays resident in VMEM.
        return pl.BlockSpec(shape, lambda i: (0, 0))

    kernel = functools.partial(
        actor_kernel,
        action_bound=float(action_bound),
        layer_1=layer_1,
        layer_2=layer_2,
    )

    flops = 2 * B_pad * (num_state * layer_1
                         + layer_1 * layer_2
                         + layer_2 * num_actions)
    transcendentals = B_pad * (num_actions + 2)  # tanh + 2 rsqrt per row
    bytes_accessed = (
        x_p.size * 4
        + w1_bf.size * 2 + w2_bf.size * 2 + w3_bf.size * 2
        + vecs.size * 4 + b3.size * 4
        + B_pad * num_actions * 4
    )

    out = pl.pallas_call(
        kernel,
        out_shape=jax.ShapeDtypeStruct((B_pad, num_actions), jnp.float32),
        grid_spec=pltpu.PrefetchScalarGridSpec(
            num_scalar_prefetch=0,
            grid=grid,
            in_specs=[
                pl.BlockSpec((TB, num_state), lambda i: (i, 0)),  # x streams
                resident(w1_bf.shape),
                resident(w2_bf.shape),
                resident(w3_bf.shape),
                resident(vecs.shape),
                resident(b3.shape),
            ],
            out_specs=pl.BlockSpec((TB, num_actions), lambda i: (i, 0)),
        ),
        compiler_params=pltpu.CompilerParams(
            dimension_semantics=("parallel",)),
        cost_estimate=pl.CostEstimate(
            flops=flops,
            transcendentals=transcendentals,
            bytes_accessed=bytes_accessed),
    )(x_p, w1_bf, w2_bf, w3_bf, vecs, b3)

    return out if B_pad == B else out[:B]


def init_actor_params(key, num_state, num_actions, layer_1=128, layer_2=128):
    """Deterministic init mirroring the module's shapes (uniform ranges as in
    the PyTorch __init__; weights stored transposed as (in, out))."""
    ks = jax.random.split(key, 8)
    # PyTorch code uses 1/sqrt(weight.size()[0]) == 1/sqrt(out_features).
    f1 = 1.0 / jnp.sqrt(layer_1)
    f2 = 1.0 / jnp.sqrt(layer_2)
    f3 = 1.0 / jnp.sqrt(layer_2)

    w1 = jax.random.uniform(ks[0], (num_state, layer_1), jnp.float32, -f1, f1)
    b1 = jax.random.uniform(ks[1], (1, layer_1), jnp.float32, -f1, f1)
    w2 = jax.random.uniform(ks[2], (layer_1, layer_2), jnp.float32, -f2, f2)
    b2 = jax.random.uniform(ks[3], (1, layer_2), jnp.float32, -f2, f2)
    w3 = jax.random.uniform(ks[4], (layer_2, num_actions), jnp.float32, -f3, f3)
    b3 = jax.random.uniform(ks[5], (1, num_actions), jnp.float32, -f3, f3)

    # LayerNorm affine params (nn.LayerNorm defaults: weight=1, bias=0)
    g1 = jnp.ones((1, layer_1), jnp.float32)
    be1 = jnp.zeros((1, layer_1), jnp.float32)
    g2 = jnp.ones((1, layer_2), jnp.float32)
    be2 = jnp.zeros((1, layer_2), jnp.float32)

    return (w1, b1, g1, be1, w2, b2, g2, be2, w3, b3)


def actor_forward_ref(x, params, action_bound):
    """Pure-JAX f32 reference (two-pass LayerNorm) for verification."""
    (w1, b1, g1, be1, w2, b2, g2, be2, w3, b3) = params

    def ln(h, gamma, beta):
        mu = jnp.mean(h, axis=-1, keepdims=True)
        var = jnp.mean((h - mu) ** 2, axis=-1, keepdims=True)
        return (h - mu) * jax.lax.rsqrt(var + LN_EPS) * gamma + beta

    h1 = jnp.maximum(ln(x @ w1 + b1, g1, be1), 0.0)
    h2 = jnp.maximum(ln(h1 @ w2 + b2, g2, be2), 0.0)
    return jnp.tanh(h2 @ w3 + b3) * action_bound


if __name__ == "__main__":
    B = 2
    NUM_STATE = 32      # corresponds to num_state=(32,) in the module
    NUM_ACTIONS = 8
    ACTION_BOUND = 2.0

    key = jax.random.PRNGKey(0)
    k_params, k_x = jax.random.split(key)
    params = init_actor_params(k_params, NUM_STATE, NUM_ACTIONS)
    x = jax.random.normal(k_x, (B, NUM_STATE), jnp.float32)

    prepared = prepare_actor_params(params)      # one-time weight prep
    out = actor_forward(x, prepared, ACTION_BOUND)
    out = jax.block_until_ready(out)

    ref = actor_forward_ref(x, params, ACTION_BOUND)
    assert out.shape == (B, NUM_ACTIONS)
    # bf16 MXU operands (f32 accumulate) -> loosened tolerance vs f32 reference.
    assert jnp.allclose(out, ref, atol=5e-2, rtol=5e-2), "mismatch vs reference"

    # TODO(synk): optimizer (Adam), checkpoint save/load and device plumbing
    # from the PyTorch module are training/infra concerns, not forward-pass ops.
    print("KERNEL_OK")
</pallas_src>

<mosaic_0001>
module attributes {stable_mosaic.version = 11 : i64} {
  func.func @actor_kernel(%arg0: i32, %arg1: memref<16x32xf32, #tpu.memory_space<vmem>>, %arg2: memref<32x128xbf16, #tpu.memory_space<vmem>>, %arg3: memref<128x128xbf16, #tpu.memory_space<vmem>>, %arg4: memref<128x8xbf16, #tpu.memory_space<vmem>>, %arg5: memref<8x128xf32, #tpu.memory_space<vmem>>, %arg6: memref<1x8xf32, #tpu.memory_space<vmem>>, %arg7: memref<16x8xf32, #tpu.memory_space<vmem>>) attributes {dimension_semantics = [#tpu.dimension_semantics<parallel>], iteration_bounds = array<i64: 1>, scalar_prefetch = 0 : i64, scratch_operands = 0 : i64, tpu.core_type = #tpu.core_type<tc>, window_params = [{transform_indices = @transform_0, window_bounds = array<i64: 16, 32>}, {pipeline_mode = #tpu.pipeline_mode<synchronous>, transform_indices = @transform_1, window_bounds = array<i64: 32, 128>}, {pipeline_mode = #tpu.pipeline_mode<synchronous>, transform_indices = @transform_2, window_bounds = array<i64: 128, 128>}, {pipeline_mode = #tpu.pipeline_mode<synchronous>, transform_indices = @transform_3, window_bounds = array<i64: 128, 8>}, {pipeline_mode = #tpu.pipeline_mode<synchronous>, transform_indices = @transform_4, window_bounds = array<i64: 8, 128>}, {pipeline_mode = #tpu.pipeline_mode<synchronous>, transform_indices = @transform_5, window_bounds = array<i64: 1, 8>}, {transform_indices = @transform_6, window_bounds = array<i64: 16, 8>}]} {
    %c0 = arith.constant 0 : index
    %c0_0 = arith.constant 0 : index
    %0 = vector.load %arg1[%c0, %c0_0] : memref<16x32xf32, #tpu.memory_space<vmem>>, vector<16x32xf32>
    %1 = arith.truncf %0 : vector<16x32xf32> to vector<16x32xbf16>
    %c0_1 = arith.constant 0 : index
    %c0_2 = arith.constant 0 : index
    %2 = vector.load %arg5[%c0_1, %c0_2] : memref<8x128xf32, #tpu.memory_space<vmem>>, vector<1x128xf32>
    %c1 = arith.constant 1 : index
    %c0_3 = arith.constant 0 : index
    %3 = vector.load %arg5[%c1, %c0_3] : memref<8x128xf32, #tpu.memory_space<vmem>>, vector<1x128xf32>
    %c2 = arith.constant 2 : index
    %c0_4 = arith.constant 0 : index
    %4 = vector.load %arg5[%c2, %c0_4] : memref<8x128xf32, #tpu.memory_space<vmem>>, vector<1x128xf32>
    %c3 = arith.constant 3 : index
    %c0_5 = arith.constant 0 : index
    %5 = vector.load %arg5[%c3, %c0_5] : memref<8x128xf32, #tpu.memory_space<vmem>>, vector<1x128xf32>
    %c4 = arith.constant 4 : index
    %c0_6 = arith.constant 0 : index
    %6 = vector.load %arg5[%c4, %c0_6] : memref<8x128xf32, #tpu.memory_space<vmem>>, vector<1x128xf32>
    %c5 = arith.constant 5 : index
    %c0_7 = arith.constant 0 : index
    %7 = vector.load %arg5[%c5, %c0_7] : memref<8x128xf32, #tpu.memory_space<vmem>>, vector<1x128xf32>
    %c0_8 = arith.constant 0 : index
    %c0_9 = arith.constant 0 : index
    %8 = vector.load %arg2[%c0_8, %c0_9] : memref<32x128xbf16, #tpu.memory_space<vmem>>, vector<32x128xbf16>
    %cst = arith.constant dense<0.000000e+00> : vector<16x128xf32>
    %9 = tpu.matmul %1, %8, %cst {dimension_numbers = #tpu.dot_dimension_numbers<[1], [0], [0], [1], [0, 0, 1, 1], [], []>} : vector<16x32xbf16>, vector<32x128xbf16>, vector<16x128xf32> -> vector<16x128xf32>
    %10 = vector.broadcast %2 : vector<1x128xf32> to vector<16x128xf32>
    %11 = arith.addf %9, %10 : vector<16x128xf32>
    %cst_10 = arith.constant dense<0.000000e+00> : vector<16xf32>
    %12 = vector.multi_reduction <add>, %11, %cst_10 [1] : vector<16x128xf32> to vector<16xf32>
    %13 = vector.shape_cast %12 : vector<16xf32> to vector<16x1xf32>
    %14 = arith.mulf %11, %11 : vector<16x128xf32>
    %cst_11 = arith.constant dense<0.000000e+00> : vector<16xf32>
    %15 = vector.multi_reduction <add>, %14, %cst_11 [1] : vector<16x128xf32> to vector<16xf32>
    %16 = vector.shape_cast %15 : vector<16xf32> to vector<16x1xf32>
    %cst_12 = arith.constant 7.812500e-03 : f32
    %17 = vector.broadcast %cst_12 : f32 to vector<16x1xf32>
    %18 = arith.mulf %13, %17 : vector<16x1xf32>
    %cst_13 = arith.constant 7.812500e-03 : f32
    %19 = vector.broadcast %cst_13 : f32 to vector<16x1xf32>
    %20 = arith.mulf %16, %19 : vector<16x1xf32>
    %21 = arith.mulf %18, %18 : vector<16x1xf32>
    %22 = arith.subf %20, %21 : vector<16x1xf32>
    %23 = vector.broadcast %18 : vector<16x1xf32> to vector<16x128xf32>
    %24 = arith.subf %11, %23 : vector<16x128xf32>
    %cst_14 = arith.constant 9.99999974E-6 : f32
    %25 = vector.broadcast %cst_14 : f32 to vector<16x1xf32>
    %26 = arith.addf %22, %25 : vector<16x1xf32>
    %27 = math.rsqrt %26 : vector<16x1xf32>
    %28 = vector.broadcast %27 : vector<16x1xf32> to vector<16x128xf32>
    %29 = arith.mulf %24, %28 : vector<16x128xf32>
    %30 = vector.broadcast %3 : vector<1x128xf32> to vector<16x128xf32>
    %31 = arith.mulf %29, %30 : vector<16x128xf32>
    %32 = vector.broadcast %4 : vector<1x128xf32> to vector<16x128xf32>
    %33 = arith.addf %31, %32 : vector<16x128xf32>
    %cst_15 = arith.constant 0.000000e+00 : f32
    %34 = vector.broadcast %cst_15 : f32 to vector<16x128xf32>
    %35 = arith.maximumf %33, %34 : vector<16x128xf32>
    %36 = arith.truncf %35 : vector<16x128xf32> to vector<16x128xbf16>
    %c0_16 = arith.constant 0 : index
    %c0_17 = arith.constant 0 : index
    %37 = vector.load %arg3[%c0_16, %c0_17] : memref<128x128xbf16, #tpu.memory_space<vmem>>, vector<128x128xbf16>
    %cst_18 = arith.constant dense<0.000000e+00> : vector<16x128xf32>
    %38 = tpu.matmul %36, %37, %cst_18 {dimension_numbers = #tpu.dot_dimension_numbers<[1], [0], [0], [1], [0, 0, 1, 1], [], []>} : vector<16x128xbf16>, vector<128x128xbf16>, vector<16x128xf32> -> vector<16x128xf32>
    %39 = vector.broadcast %5 : vector<1x128xf32> to vector<16x128xf32>
    %40 = arith.addf %38, %39 : vector<16x128xf32>
    %cst_19 = arith.constant dense<0.000000e+00> : vector<16xf32>
    %41 = vector.multi_reduction <add>, %40, %cst_19 [1] : vector<16x128xf32> to vector<16xf32>
    %42 = vector.shape_cast %41 : vector<16xf32> to vector<16x1xf32>
    %43 = arith.mulf %40, %40 : vector<16x128xf32>
    %cst_20 = arith.constant dense<0.000000e+00> : vector<16xf32>
    %44 = vector.multi_reduction <add>, %43, %cst_20 [1] : vector<16x128xf32> to vector<16xf32>
    %45 = vector.shape_cast %44 : vector<16xf32> to vector<16x1xf32>
    %cst_21 = arith.constant 7.812500e-03 : f32
    %46 = vector.broadcast %cst_21 : f32 to vector<16x1xf32>
    %47 = arith.mulf %42, %46 : vector<16x1xf32>
    %cst_22 = arith.constant 7.812500e-03 : f32
    %48 = vector.broadcast %cst_22 : f32 to vector<16x1xf32>
    %49 = arith.mulf %45, %48 : vector<16x1xf32>
    %50 = arith.mulf %47, %47 : vector<16x1xf32>
    %51 = arith.subf %49, %50 : vector<16x1xf32>
    %52 = vector.broadcast %47 : vector<16x1xf32> to vector<16x128xf32>
    %53 = arith.subf %40, %52 : vector<16x128xf32>
    %cst_23 = arith.constant 9.99999974E-6 : f32
    %54 = vector.broadcast %cst_23 : f32 to vector<16x1xf32>
    %55 = arith.addf %51, %54 : vector<16x1xf32>
    %56 = math.rsqrt %55 : vector<16x1xf32>
    %57 = vector.broadcast %56 : vector<16x1xf32> to vector<16x128xf32>
    %58 = arith.mulf %53, %57 : vector<16x128xf32>
    %59 = vector.broadcast %6 : vector<1x128xf32> to vector<16x128xf32>
    %60 = arith.mulf %58, %59 : vector<16x128xf32>
    %61 = vector.broadcast %7 : vector<1x128xf32> to vector<16x128xf32>
    %62 = arith.addf %60, %61 : vector<16x128xf32>
    %cst_24 = arith.constant 0.000000e+00 : f32
    %63 = vector.broadcast %cst_24 : f32 to vector<16x128xf32>
    %64 = arith.maximumf %62, %63 : vector<16x128xf32>
    %65 = arith.truncf %64 : vector<16x128xf32> to vector<16x128xbf16>
    %c0_25 = arith.constant 0 : index
    %c0_26 = arith.constant 0 : index
    %66 = vector.load %arg4[%c0_25, %c0_26] : memref<128x8xbf16, #tpu.memory_space<vmem>>, vector<128x8xbf16>
    %cst_27 = arith.constant dense<0.000000e+00> : vector<16x8xf32>
    %67 = tpu.matmul %65, %66, %cst_27 {dimension_numbers = #tpu.dot_dimension_numbers<[1], [0], [0], [1], [0, 0, 1, 1], [], []>} : vector<16x128xbf16>, vector<128x8xbf16>, vector<16x8xf32> -> vector<16x8xf32>
    %c0_28 = arith.constant 0 : index
    %c0_29 = arith.constant 0 : index
    %68 = vector.load %arg6[%c0_28, %c0_29] : memref<1x8xf32, #tpu.memory_space<vmem>>, vector<1x8xf32>
    %69 = vector.broadcast %68 : vector<1x8xf32> to vector<16x8xf32>
    %70 = arith.addf %67, %69 : vector<16x8xf32>
    %71 = math.tanh %70 : vector<16x8xf32>
    %cst_30 = arith.constant 2.000000e+00 : f32
    %72 = vector.broadcast %cst_30 : f32 to vector<16x8xf32>
    %73 = arith.mulf %71, %72 : vector<16x8xf32>
    %c0_31 = arith.constant 0 : index
    %c0_32 = arith.constant 0 : index
    %74 = vector.load %arg7[%c0_31, %c0_32] : memref<16x8xf32, #tpu.memory_space<vmem>>, vector<16x8xf32>
    tpu.vector_store %arg7[%c0_31, %c0_32], %73 {strides = array<i32>} : memref<16x8xf32, #tpu.memory_space<vmem>>, vector<16x8xf32>,
    return
  }
  func.func @transform_0(%arg0: i32) -> (i32, i32) {
    %c0_i32 = arith.constant 0 : i32
    %c0_i32_0 = arith.constant 0 : i32
    return %arg0, %c0_i32 : i32, i32
  }
  func.func @transform_1(%arg0: i32) -> (i32, i32) {
    %c0_i32 = arith.constant 0 : i32
    %c0_i32_0 = arith.constant 0 : i32
    %c0_i32_1 = arith.constant 0 : i32
    return %c0_i32, %c0_i32_0 : i32, i32
  }
  func.func @transform_2(%arg0: i32) -> (i32, i32) {
    %c0_i32 = arith.constant 0 : i32
    %c0_i32_0 = arith.constant 0 : i32
    %c0_i32_1 = arith.constant 0 : i32
    return %c0_i32, %c0_i32_0 : i32, i32
  }
  func.func @transform_3(%arg0: i32) -> (i32, i32) {
    %c0_i32 = arith.constant 0 : i32
    %c0_i32_0 = arith.constant 0 : i32
    %c0_i32_1 = arith.constant 0 : i32
    return %c0_i32, %c0_i32_0 : i32, i32
  }
  func.func @transform_4(%arg0: i32) -> (i32, i32) {
    %c0_i32 = arith.constant 0 : i32
    %c0_i32_0 = arith.constant 0 : i32
    %c0_i32_1 = arith.constant 0 : i32
    return %c0_i32, %c0_i32_0 : i32, i32
  }
  func.func @transform_5(%arg0: i32) -> (i32, i32) {
    %c0_i32 = arith.constant 0 : i32
    %c0_i32_0 = arith.constant 0 : i32
    %c0_i32_1 = arith.constant 0 : i32
    return %c0_i32, %c0_i32_0 : i32, i32
  }
  func.func @transform_6(%arg0: i32) -> (i32, i32) {
    %c0_i32 = arith.constant 0 : i32
    %c0_i32_0 = arith.constant 0 : i32
    return %arg0, %c0_i32 : i32, i32
  }
}

</mosaic_0001>

<bundles_post_ra>
// kernel: tpu_custom_call.1
= control target key start
LH: loop header
LB: loop body
LE: loop exit
PB: predicated region body
PF: predicated region fallthrough
CT: control target
= control target key end

     0   :  { %11 = vsyncpa [#allocation3], 0  ;;  %s706_s0 = inlined_call_operand.hbm [shape: f32[16,32], index: 0, kind: input, shape index: {}]   ;;  %s707_s1 = inlined_call_operand.hbm [shape: bf16[32,128], index: 1, kind: input, shape index: {}]   ;;  %s708_s2 = inlined_call_operand.vmem [shape: bf16[128,128], index: 2, kind: input, shape index: {}]   ;;  %s709_s3 = inlined_call_operand.vmem [shape: bf16[128,8], index: 3, kind: input, shape index: {}]   ;;  %s710_s4 = inlined_call_operand.hbm [shape: f32[8,128], index: 4, kind: input, shape index: {}]   ;;  %s711_s5 = inlined_call_operand.vmem [shape: f32[1,8], index: 5, kind: input, shape index: {}]   ;;  %s712_s6 = inlined_call_operand.vmem [shape: f32[16,8], index: 6, kind: output, shape index: {}]  }
   0x1   :  { %12 = vsyncpa [#allocation5], 0  ;;  %s30_s23 = sshll.u32 %s707_s1, 4  ;;  %s586_s24 = smov [#allocation4]   ;;  %s31_s23 = int_to_ptr.hbm [resolvable:$true] %s30_s23 }
   0x2   :  { %s32_s25 = sshll.u32 %s586_s24, 4  ;;  %s17_s28 = sshll.u32 %s706_s0, 4  ;;  %s33_s25 = int_to_ptr.vmem [resolvable:$true] %s32_s25  ;;  %s18_s28 = int_to_ptr.hbm [resolvable:$true] %s17_s28 }
   0x3   :  { %s587_s29 = smov 64   ;;  %s588_s30 = smov 4  }
   0x4   :  { %38 = dma.hbm_to_vmem [thread:$0]  %s31_s23, 256, %s33_s25, [#allocation5], %s587_s29, %s587_s29, %s588_s30  }
   0x5   :  { %s589_s7 = smov [#allocation2]   ;;  %s590_s9 = smov 128  }
   0x6   :  { %s19_s8 = sshll.u32 %s589_s7, 4  ;;  %s591_s10 = smov 8   ;;  %s20_s8 = int_to_ptr.vmem [resolvable:$true] %s19_s8 }
   0x7   :  { %25 = dma.hbm_to_vmem [thread:$0]  %s18_s28, 256, %s20_s8, [#allocation3], %s590_s9, %s590_s9, %s591_s10  }
   0x8   :  { %s48_s12 = sshll.u32 %s710_s4, 4  ;;  %s592_s13 = smov [#allocation6]   ;;  %s49_s12 = int_to_ptr.hbm [resolvable:$true] %s48_s12 }
   0x9   :  { %s50_s14 = sshll.u32 %s592_s13, 4  ;;  %s51_s14 = int_to_ptr.vmem [resolvable:$true] %s50_s14 }
   0xa   :  { %53 = dma.hbm_to_vmem [thread:$0]  %s49_s12, 128, %s51_s14, [#allocation5]  }
   0xb   :  { %582 = dma.done.wait [#allocation3], 256  }
   0xc   :  { %583 = vsyncadd [#allocation3], 4294967040 }
   0xd   :  { %584 = dma.done.wait [#allocation5], 384  }
   0xe   :  { %585 = vsyncadd [#allocation5], 4294966912  ;;  %v467_v0 = vld [vmem:[#allocation4 + $0x8] sm:$0xff]  ;;  %v466_v1 = vld [vmem:[#allocation4] sm:$0xff]  ;;  %vm95_vm0 = vcmask 261120   ;;  %vm384_vm13 = vcmask 64512  }
   0xf   :  { %v69_v2 = vld [vmem:[#allocation2] sm:$0xff]  ;;  %v70_v3 = vld [vmem:[#allocation2 + $0x8] sm:$0xff]  ;;  %105 = vmatpush.bf16.msra.mxu0 %v467_v0  ;;  %v475_v12 = vld [vmem:[%s708_s2 + $0x38] sm:$0xff] }
  0x10   :  { %v71_v4 = vpack.c.bf16 %v70_v3, %v69_v2  ;;  %v491_v5 = vld [vmem:[#allocation6] ss:$0 sm:$0xff]  ;;  %231 = vmatpush.bf16.msra.mxu1 %v475_v12  ;;  %v474_v13 = vld [vmem:[%s708_s2 + $0x30] sm:$0xff]  ;;  %v473_v14 = vld [vmem:[%s708_s2 + $0x28] sm:$0xff] }
  0x11   :  { %v472_v15 = vld [vmem:[%s708_s2 + $0x20] sm:$0xff]  ;;  %v471_v16 = vld [vmem:[%s708_s2 + $0x18] sm:$0xff]  ;;  %v470_v18 = vld [vmem:[%s708_s2 + $0x10] sm:$0xff] }
  0x12   :  { %v469_v21 = vld [vmem:[%s708_s2 + $0x8] sm:$0xff]  ;;  %v468_v25 = vld [vmem:[%s708_s2] sm:$0xff] }
  0x13   :  { %106 = vmatpush.bf16.msra.mxu0 %v466_v1  ;;  %v492_v47 = vld [vmem:[#allocation6 + $0x1] ss:$0 sm:$0xff]  ;;  %v493_v52 = vld [vmem:[#allocation6 + $0x2] ss:$0 sm:$0xff]  ;;  %v494_v61 = vld [vmem:[#allocation6 + $0x3] ss:$0 sm:$0xff] }
  0x14   :  { %232 = vmatpush.bf16.msra.mxu1 %v474_v13  ;;  %v477_v13 = vld [vmem:[%s709_s3 + $0x8] sm:$0xff] }
  0x16   :  { %401 = vmatmul.msk.bf16.vlgmr.msra.gmra.mxu0 %vm95_vm0, %v71_v4  ;;  %v483_v4 = vld [vmem:[%s709_s3 + $0x38] sm:$0xff] }
  0x17   :  { %366 = vmatpush.bf16.msra.mxu2 %v483_v4 }
  0x18   :  { %233 = vmatpush.bf16.msra.mxu1 %v473_v14 }
  0x1c   :  { %234 = vmatpush.bf16.msra.mxu1 %v472_v15 }
  0x20   :  { %235 = vmatpush.bf16.msra.mxu1 %v471_v16 }
  0x24   :  { %236 = vmatpush.bf16.msra.mxu1 %v470_v18 }
  0x28   :  { %237 = vmatpush.bf16.msra.mxu1 %v469_v21 }
  0x2c   :  { %238 = vmatpush.bf16.msra.mxu1 %v468_v25 }
  0x93   :  { %v108_v6 = vpop.f32.mrf.mxu0 }
  0x94   :  { %v109_v7 = vadd.f32 %v491_v5, %v108_v6  ;;  %v481_v6 = vld [vmem:[%s709_s3 + $0x28] sm:$0xff] }
  0x96   :  { %113 = vadd.xlane.f32.xlu0 %v109_v7  ;;  %v117_v8 = vmul.f32 %v109_v7, %v109_v7 }
  0x98   :  { %119 = vadd.xlane.f32.xlu1 %v117_v8  ;;  %v479_v8 = vld [vmem:[%s709_s3 + $0x18] sm:$0xff] }
  0x9b   :  { %v110_v9 = vpop.f32.mrf.mxu0 }
  0x9c   :  { %v637_v10 = vadd.f32 %v491_v5, %v110_v9  ;;  %v482_v5 = vld [vmem:[%s709_s3 + $0x30] sm:$0xff] }
  0x9d   :  { %367 = vmatpush.bf16.msra.mxu2 %v482_v5 }
  0x9e   :  { %115 = vadd.xlane.f32.xlu0 %v637_v10  ;;  %v118_v11 = vmul.f32 %v637_v10, %v637_v10 }
  0xa0   :  { %121 = vadd.xlane.f32.xlu1 %v118_v11 }
  0xa1   :  { %368 = vmatpush.bf16.msra.mxu2 %v481_v6 }
 0x109   :  { %v114_v17 = vpop.xlane.xlu0 %113 }
 0x10a   :  { %v123_v19 = vmul.f32 0.0078125, %v114_v17  ;;  %v476_v17 = vld [vmem:[%s709_s3] sm:$0xff] }
 0x10b   :  { %v120_v20 = vpop.xlane.xlu1 %119 }
 0x10c   :  { %v127_v22 = vmul.f32 %v123_v19, %v123_v19  ;;  %v125_v23 = vmul.f32 0.0078125, %v120_v20  ;;  %v131_v44 = vsub.f32 %v109_v7, %v123_v19  ;;  %v480_v7 = vld [vmem:[%s709_s3 + $0x20] sm:$0xff] }
 0x10d   :  { %369 = vmatpush.bf16.msra.mxu2 %v480_v7 }
 0x10e   :  { %v129_v24 = vsub.f32 %v125_v23, %v127_v22 }
 0x110   :  { %v133_v26 = vadd.f32 1e-05, %v129_v24 }
 0x111   :  { %v116_v27 = vpop.xlane.xlu0 %115  ;;  %370 = vmatpush.bf16.msra.mxu2 %v479_v8 }
 0x112   :  { %498 = vrsqrt.f32 %v133_v26  ;;  %v124_v28 = vmul.f32 0.0078125, %v116_v27  ;;  %vm141_vm2 = vweird.f32 %v133_v26 }
 0x113   :  { %v122_v29 = vpop.xlane.xlu1 %121 }
 0x114   :  { %v128_v30 = vmul.f32 %v124_v28, %v124_v28  ;;  %v126_v31 = vmul.f32 0.0078125, %v122_v29  ;;  %v132_v50 = vsub.f32 %v637_v10, %v124_v28  ;;  %v478_v10 = vld [vmem:[%s709_s3 + $0x10] sm:$0xff] }
 0x115   :  { %371 = vmatpush.bf16.msra.mxu2 %v478_v10 }
 0x116   :  { %v130_v32 = vsub.f32 %v126_v31, %v128_v30 }
 0x118   :  { %v499_v33 = vpop.eup %498  ;;  %v134_v34 = vadd.f32 1e-05, %v130_v32 }
 0x119   :  { %v136_v35 = vmul.f32 %v499_v33, %v133_v26  ;;  %vm142_vm1 = vweird.f32 %v499_v33  ;;  %372 = vmatpush.bf16.msra.mxu2 %v477_v13 }
 0x11a   :  { %500 = vrsqrt.f32 %v134_v34  ;;  %vm143_vm3 = vmor %vm141_vm2, %vm142_vm1  ;;  %vm151_vm5 = vweird.f32 %v134_v34 }
 0x11b   :  { %v137_v36 = vmul.f32 %v499_v33, %v136_v35 }
 0x11d   :  { %v138_v37 = vmul.f32 0.5, %v137_v36  ;;  %373 = vmatpush.bf16.msra.mxu2 %v476_v17 }
 0x11f   :  { %v139_v38 = vsub.f32 1.5, %v138_v37 }
 0x120   :  { %v501_v39 = vpop.eup %500 }
 0x121   :  { %v140_v40 = vmul.f32 %v499_v33, %v139_v38  ;;  %v146_v41 = vmul.f32 %v501_v39, %v134_v34  ;;  %vm152_vm4 = vweird.f32 %v501_v39 }
 0x122   :  { %vm153_vm6 = vmor %vm151_vm5, %vm152_vm4 }
 0x123   :  { %v147_v42 = vmul.f32 %v501_v39, %v146_v41  ;;  %v144_v43 = vsel %vm143_vm3, %v499_v33, %v140_v40 }
 0x124   :  { %v155_v46 = vmul.f32 %v144_v43, %v131_v44  ;;  %v496_v44 = vld [vmem:[#allocation6 + $0x5] ss:$0 sm:$0xff] }
 0x125   :  { %v148_v45 = vmul.f32 0.5, %v147_v42 }
 0x126   :  { %v158_v51 = vmul.f32 %v492_v47, %v155_v46 }
 0x127   :  { %v149_v48 = vsub.f32 1.5, %v148_v45 }
 0x128   :  { %v161_v56 = vadd.f32 %v493_v52, %v158_v51 }
 0x129   :  { %v150_v49 = vmul.f32 %v501_v39, %v149_v48 }
 0x12a   :  { %v163_v58 = vmax.f32 %v161_v56, 0.0 }
 0x12b   :  { %v154_v53 = vsel %vm153_vm6, %v501_v39, %v150_v49  ;;  %v495_v39 = vld [vmem:[#allocation6 + $0x4] ss:$0 sm:$0xff] }
 0x12c   :  { %v156_v54 = vmul.f32 %v154_v53, %v132_v50  ;;  %v497_v53 = vld [vmem:[%s711_s5] ss:$0 sm:$0xff] }
 0x12e   :  { %v159_v55 = vmul.f32 %v492_v47, %v156_v54 }
 0x130   :  { %v162_v57 = vadd.f32 %v493_v52, %v159_v55 }
 0x132   :  { %v164_v59 = vmax.f32 %v162_v57, 0.0 }
 0x134   :  { %v165_v60 = vpack.c.bf16 %v164_v59, %v163_v58 }
 0x136   :  { %239 = vmatmul.bf16.vlgmr.msra.gmra.mxu1 %v165_v60 }
 0x1b3   :  { %v240_v62 = vpop.f32.mrf.mxu1 }
 0x1b4   :  { %v241_v63 = vadd.f32 %v494_v61, %v240_v62 }
 0x1b6   :  { %245 = vadd.xlane.f32.xlu2 %v241_v63  ;;  %v249_v0 = vmul.f32 %v241_v63, %v241_v63 }
 0x1b8   :  { %251 = vadd.xlane.f32.xlu0 %v249_v0 }
 0x1bb   :  { %v242_v1 = vpop.f32.mrf.mxu1 }
 0x1bc   :  { %v667_v2 = vadd.f32 %v494_v61, %v242_v1 }
 0x1be   :  { %247 = vadd.xlane.f32.xlu2 %v667_v2  ;;  %v250_v3 = vmul.f32 %v667_v2, %v667_v2 }
 0x1c0   :  { %253 = vadd.xlane.f32.xlu1 %v250_v3 }
 0x229   :  { %v246_v9 = vpop.xlane.xlu2 %245 }
 0x22a   :  { %v255_v11 = vmul.f32 0.0078125, %v246_v9 }
 0x22b   :  { %v252_v12 = vpop.xlane.xlu0 %251 }
 0x22c   :  { %v259_v14 = vmul.f32 %v255_v11, %v255_v11  ;;  %v257_v15 = vmul.f32 0.0078125, %v252_v12  ;;  %v263_v36 = vsub.f32 %v241_v63, %v255_v11 }
 0x22e   :  { %v261_v16 = vsub.f32 %v257_v15, %v259_v14 }
 0x230   :  { %v265_v18 = vadd.f32 1e-05, %v261_v16 }
 0x231   :  { %v248_v19 = vpop.xlane.xlu2 %247 }
 0x232   :  { %502 = vrsqrt.f32 %v265_v18  ;;  %v256_v20 = vmul.f32 0.0078125, %v248_v19  ;;  %vm273_vm8 = vweird.f32 %v265_v18 }
 0x233   :  { %v254_v21 = vpop.xlane.xlu1 %253 }
 0x234   :  { %v260_v22 = vmul.f32 %v256_v20, %v256_v20  ;;  %v258_v23 = vmul.f32 0.0078125, %v254_v21  ;;  %v264_v42 = vsub.f32 %v667_v2, %v256_v20 }
 0x236   :  { %v262_v24 = vsub.f32 %v258_v23, %v260_v22 }
 0x238   :  { %v503_v25 = vpop.eup %502  ;;  %v266_v26 = vadd.f32 1e-05, %v262_v24 }
 0x239   :  { %v268_v27 = vmul.f32 %v503_v25, %v265_v18  ;;  %vm274_vm7 = vweird.f32 %v503_v25 }
 0x23a   :  { %504 = vrsqrt.f32 %v266_v26  ;;  %vm275_vm9 = vmor %vm273_vm8, %vm274_vm7  ;;  %vm283_vm11 = vweird.f32 %v266_v26 }
 0x23b   :  { %v269_v28 = vmul.f32 %v503_v25, %v268_v27 }
 0x23d   :  { %v270_v29 = vmul.f32 0.5, %v269_v28 }
 0x23f   :  { %v271_v30 = vsub.f32 1.5, %v270_v29 }
 0x240   :  { %v505_v31 = vpop.eup %504 }
 0x241   :  { %v272_v32 = vmul.f32 %v503_v25, %v271_v30  ;;  %v278_v33 = vmul.f32 %v505_v31, %v266_v26  ;;  %vm284_vm10 = vweird.f32 %v505_v31 }
 0x242   :  { %vm285_vm12 = vmor %vm283_vm11, %vm284_vm10 }
 0x243   :  { %v279_v34 = vmul.f32 %v505_v31, %v278_v33  ;;  %v276_v35 = vsel %vm275_vm9, %v503_v25, %v272_v32 }
 0x244   :  { %v287_v38 = vmul.f32 %v276_v35, %v263_v36 }
 0x245   :  { %v280_v37 = vmul.f32 0.5, %v279_v34 }
 0x246   :  { %v290_v43 = vmul.f32 %v495_v39, %v287_v38 }
 0x247   :  { %v281_v40 = vsub.f32 1.5, %v280_v37 }
 0x248   :  { %v293_v48 = vadd.f32 %v496_v44, %v290_v43 }
 0x249   :  { %v282_v41 = vmul.f32 %v505_v31, %v281_v40 }
 0x24a   :  { %v295_v50 = vmax.f32 %v293_v48, 0.0 }
 0x24b   :  { %v286_v45 = vsel %vm285_vm12, %v505_v31, %v282_v41 }
 0x24c   :  { %v288_v46 = vmul.f32 %v286_v45, %v264_v42 }
 0x24e   :  { %v291_v47 = vmul.f32 %v495_v39, %v288_v46 }
 0x250   :  { %v294_v49 = vadd.f32 %v496_v44, %v291_v47 }
 0x252   :  { %v296_v51 = vmax.f32 %v294_v49, 0.0 }
 0x254   :  { %v297_v52 = vpack.c.bf16 %v296_v51, %v295_v50 }
 0x256   :  { %374 = vmatmul.bf16.vlgmr.msra.gmra.mxu2 %v297_v52 }
 0x2d9   :  { %v375_v54 = vpop.f32.mrf.mxu2 }
 0x2da   :  { %v376_v55 = vadd.f32 %v497_v53, %v375_v54 }
 0x2dc   :  { %506 = vtanh.f32 %v376_v55 }
 0x2e1   :  { %v377_v56 = vpop.f32.mrf.mxu2 }
 0x2e2   :  { %v507_v57 = vpop.eup %506  ;;  %v378_v58 = vadd.f32 %v497_v53, %v377_v56 }
 0x2e3   :  { %v382_v59 = vmul.f32 2.0, %v507_v57 }
 0x2e4   :  { %508 = vtanh.f32 %v378_v58 }
 0x2e5   :  { %385 = vst.msk [vmem:[%s712_s6] sm:$0xff] %vm384_vm13, %v382_v59 }
 0x2ea   :  { %v509_v60 = vpop.eup %508 }
 0x2eb   :  { %v383_v61 = vmul.f32 2.0, %v509_v60 }
 0x2ed   :  { %386 = vst.msk [vmem:[%s712_s6 + $0x8] sm:$0xff] %vm384_vm13, %v383_v61 }
 0x2ee   :  { %391 = vsyncpa [#allocation3], 1 }
 0x2ef   :  { %392 = vsyncpa [#allocation5], 1 }

</bundles_post_ra>
